<compile_context>
chip_gen: v7x
topology: tpu7x:2x2x1
jax: 0.10.0
libtpu: 0.0.40
codegen_flags: <defaults>
</compile_context>

<pallas_src>
import math
import functools

import jax
import jax.numpy as jnp
from jax.experimental import pallas as pl
from jax.experimental.pallas import tpu as pltpu


VMEM_LIMIT = 48 * 1024 * 1024   # < v7x 64 MiB, raises v5e/v6e scoped defaults


# ----------------------------------------------------------------------------
# helpers
# ----------------------------------------------------------------------------

def _pick_tile(dim, pref, aligns=(128, 16, 8)):
    """Largest tile <= pref that is a multiple of one of `aligns` (tried in
    order) and divides `dim`; otherwise the full dimension (full-extent blocks
    are always legal)."""
    if dim <= pref:
        return dim
    for a in aligns:
        t = (pref // a) * a
        while t >= a:
            if dim % t == 0:
                return t
            t -= a
    return dim


# ----------------------------------------------------------------------------
# Linear kernel: (optional fused LayerNorm) -> matmul -> bias -> act -> +res
# ----------------------------------------------------------------------------

def _linear_kernel(*refs, act, nk, has_residual, has_ln, eps):
    it = iter(refs)
    x_ref = next(it)
    w_ref = next(it)
    b_ref = next(it)
    g_ref = next(it) if has_ln else None
    be_ref = next(it) if has_ln else None
    r_ref = next(it) if has_residual else None
    o_ref = next(it)
    acc_ref = next(it)

    @pl.when(pl.program_id(2) == 0)
    def _():
        acc_ref[...] = jnp.zeros_like(acc_ref)

    x = x_ref[...]
    if has_ln:
        xf = x.astype(jnp.float32)
        mu = jnp.mean(xf, axis=-1, keepdims=True)
        var = jnp.mean((xf - mu) ** 2, axis=-1, keepdims=True)
        xf = (xf - mu) * jax.lax.rsqrt(var + eps)
        x = (xf * g_ref[...] + be_ref[...]).astype(jnp.bfloat16)
    else:
        x = x.astype(jnp.bfloat16)          # no-op when already bf16

    acc_ref[...] += jnp.dot(x, w_ref[...].astype(jnp.bfloat16),
                            preferred_element_type=jnp.float32)

    @pl.when(pl.program_id(2) == nk - 1)
    def _():
        y = acc_ref[...] + b_ref[...]
        if act == "relu":
            y = jnp.maximum(y, 0.0)
        elif act == "sigmoid":
            y = jax.nn.sigmoid(y)
        if has_residual:
            y = y + r_ref[...].astype(jnp.float32)
        o_ref[...] = y.astype(o_ref.dtype)


def linear(x, w, b, act=None, residual=None, ln=None, eps=1e-6,
           out_dtype=jnp.bfloat16):
    """y = act(LN?(x) @ w + b) [+ residual].  x: (..., K), w: (K, N) bf16."""
    lead, K = x.shape[:-1], x.shape[-1]
    N = w.shape[-1]
    x2 = x.reshape(-1, K)
    M = x2.shape[0]

    tm = _pick_tile(M, 256, (128, 16, 8))
    tn = _pick_tile(N, 512, (128,))
    tk = K if ln is not None else _pick_tile(K, 512, (128,))
    nk = K // tk
    grid = (M // tm, N // tn, nk)

    in_specs = [
        pl.BlockSpec((tm, tk), lambda i, j, k: (i, k)),
        pl.BlockSpec((tk, tn), lambda i, j, k: (k, j)),
        pl.BlockSpec((1, tn), lambda i, j, k: (0, j)),
    ]
    args = [x2, w, b.reshape(1, N).astype(jnp.float32)]
    if ln is not None:
        g, be = ln
        in_specs += [pl.BlockSpec((1, K), lambda i, j, k: (0, 0)),
                     pl.BlockSpec((1, K), lambda i, j, k: (0, 0))]
        args += [g.reshape(1, K).astype(jnp.float32),
                 be.reshape(1, K).astype(jnp.float32)]
    if residual is not None:
        in_specs.append(pl.BlockSpec((tm, tn), lambda i, j, k: (i, j)))
        args.append(residual.reshape(M, N))

    cost = pl.CostEstimate(
        flops=2 * M * N * K,
        transcendentals=M * N if act == "sigmoid" else 0,
        bytes_accessed=2 * (M * K + K * N + M * N) + 4 * N,
    )

    out = pl.pallas_call(
        functools.partial(_linear_kernel, act=act, nk=nk,
                          has_residual=residual is not None,
                          has_ln=ln is not None, eps=eps),
        grid=grid,
        in_specs=in_specs,
        out_specs=pl.BlockSpec((tm, tn), lambda i, j, k: (i, j)),
        out_shape=jax.ShapeDtypeStruct((M, N), out_dtype),
        scratch_shapes=[pltpu.VMEM((tm, tn), jnp.float32)],
        compiler_params=pltpu.CompilerParams(
            dimension_semantics=("parallel", "parallel", "arbitrary"),
            vmem_limit_bytes=VMEM_LIMIT),
        cost_estimate=cost,
    )(*args)
    return out.reshape(*lead, N)


# ----------------------------------------------------------------------------
# Standalone LayerNorm (only for the final norm whose output is returned)
# ----------------------------------------------------------------------------

def _layernorm_kernel(x_ref, g_ref, b_ref, o_ref, *, eps):
    x = x_ref[...].astype(jnp.float32)
    mu = jnp.mean(x, axis=-1, keepdims=True)
    var = jnp.mean((x - mu) ** 2, axis=-1, keepdims=True)
    y = (x - mu) * jax.lax.rsqrt(var + eps)
    o_ref[...] = (y * g_ref[...] + b_ref[...]).astype(o_ref.dtype)


def layer_norm(x, g, b, eps=1e-6):
    lead, D = x.shape[:-1], x.shape[-1]
    x2 = x.reshape(-1, D)
    M = x2.shape[0]
    tm = _pick_tile(M, 512, (128, 16, 8))
    out = pl.pallas_call(
        functools.partial(_layernorm_kernel, eps=eps),
        grid=(M // tm,),
        in_specs=[
            pl.BlockSpec((tm, D), lambda i: (i, 0)),
            pl.BlockSpec((1, D), lambda i: (0, 0)),
            pl.BlockSpec((1, D), lambda i: (0, 0)),
        ],
        out_specs=pl.BlockSpec((tm, D), lambda i: (i, 0)),
        out_shape=jax.ShapeDtypeStruct((M, D), x.dtype),
        compiler_params=pltpu.CompilerParams(
            dimension_semantics=("parallel",)),
    )(x2, g.reshape(1, D), b.reshape(1, D))
    return out.reshape(*lead, D)


# ----------------------------------------------------------------------------
# Attention kernels — heads handled in-kernel, lane-dense (B, Lq, D) output
# ----------------------------------------------------------------------------

def _attend(q, k, v, mask, scale, heads, score=None):
    """q: (Lq, D), k/v: (Lk, D) bf16; mask bool (1|Lq, Lk); score (1, Lk) f32."""
    D = q.shape[-1]
    dh = D // heads
    ctxs = []
    for h in range(heads):
        lo = h * dh
        qh = q[:, lo:lo + dh]
        kh = k[:, lo:lo + dh]
        vh = v[:, lo:lo + dh]
        s = jax.lax.dot_general(qh, kh, (((1,), (1,)), ((), ())),
                                preferred_element_type=jnp.float32) * scale
        s = jnp.where(mask, -1e9, s)
        s = s - jnp.max(s, axis=-1, keepdims=True)
        w = jnp.exp(s)
        if score is not None:
            # TODO(synk): exact MultiHeadedAttentionWithScore internals were not
            # provided; attention weights are re-weighted by ent_score per key
            # position and renormalized.
            w = w * score
        p = w * pl.reciprocal(jnp.sum(w, axis=-1, keepdims=True) + 1e-13,
                              approx=True)
        ctxs.append(jax.lax.dot_general(p.astype(jnp.bfloat16), vh,
                                        (((1,), (0,)), ((), ())),
                                        preferred_element_type=jnp.float32))
    return jnp.concatenate(ctxs, axis=-1)           # (Lq, D)


def _self_attn_kernel(qkv_ref, m_ref, o_ref, *, heads, d_model, scale):
    qkv = qkv_ref[0]                                # (L, 3D) bf16
    q = qkv[:, :d_model]
    k = qkv[:, d_model:2 * d_model]
    v = qkv[:, 2 * d_model:]
    L = q.shape[0]
    pad = m_ref[0] > 0.5                            # (1, L) key-pad mask
    row = jax.lax.broadcasted_iota(jnp.int32, (L, L), 0)
    col = jax.lax.broadcasted_iota(jnp.int32, (L, L), 1)
    mask = jnp.logical_or(pad, col > row)           # pad OR causal, in-kernel
    o_ref[0] = _attend(q, k, v, mask, scale, heads).astype(o_ref.dtype)


def self_attention(qkv, mask, heads):
    """qkv: (B, L, 3D) stacked projection; mask: (B, 1, L) key-pad (bf16)."""
    B, L, D3 = qkv.shape
    D = D3 // 3
    scale = 1.0 / math.sqrt(D // heads)
    return pl.pallas_call(
        functools.partial(_self_attn_kernel, heads=heads, d_model=D,
                          scale=scale),
        grid=(B,),
        in_specs=[pl.BlockSpec((1, L, D3), lambda b: (b, 0, 0)),
                  pl.BlockSpec((1, 1, L), lambda b: (b, 0, 0))],
        out_specs=pl.BlockSpec((1, L, D), lambda b: (b, 0, 0)),
        out_shape=jax.ShapeDtypeStruct((B, L, D), jnp.bfloat16),
        compiler_params=pltpu.CompilerParams(
            dimension_semantics=("parallel",),
            vmem_limit_bytes=VMEM_LIMIT),
    )(qkv, mask)


def _cross_attn_kernel(*refs, heads, d_model, scale, has_score):
    if has_score:
        q_ref, kv_ref, m_ref, s_ref, o_ref = refs
    else:
        q_ref, kv_ref, m_ref, o_ref = refs
        s_ref = None
    q = q_ref[0]                                    # (tq, D) bf16
    kv = kv_ref[0]                                  # (Lk, 2D) bf16
    k = kv[:, :d_model]
    v = kv[:, d_model:]
    mask = m_ref[0] > 0.5                           # (1, Lk)
    score = s_ref[0] if s_ref is not None else None
    o_ref[0] = _attend(q, k, v, mask, scale, heads,
                       score=score).astype(o_ref.dtype)


def cross_attention(q, kv, mask, heads, score=None):
    """q: (B, Lq, D); kv: (B, Lk, 2D) stacked; mask: (B, 1, Lk) bf16;
    score: (B, 1, Lk) f32 or None."""
    B, Lq, D = q.shape
    Lk = kv.shape[1]
    scale = 1.0 / math.sqrt(D // heads)
    tq = _pick_tile(Lq, 256, (128, 16, 8))
    nq = Lq // tq

    in_specs = [pl.BlockSpec((1, tq, D), lambda b, qi: (b, qi, 0)),
                pl.BlockSpec((1, Lk, 2 * D), lambda b, qi: (b, 0, 0)),
                pl.BlockSpec((1, 1, Lk), lambda b, qi: (b, 0, 0))]
    args = [q, kv, mask]
    if score is not None:
        in_specs.append(pl.BlockSpec((1, 1, Lk), lambda b, qi: (b, 0, 0)))
        args.append(score)

    return pl.pallas_call(
        functools.partial(_cross_attn_kernel, heads=heads, d_model=D,
                          scale=scale, has_score=score is not None),
        grid=(B, nq),
        in_specs=in_specs,
        out_specs=pl.BlockSpec((1, tq, D), lambda b, qi: (b, qi, 0)),
        out_shape=jax.ShapeDtypeStruct((B, Lq, D), jnp.bfloat16),
        compiler_params=pltpu.CompilerParams(
            dimension_semantics=("parallel", "parallel"),
            vmem_limit_bytes=VMEM_LIMIT),
    )(*args)


def _copy_attn_kernel(q_ref, k_ref, m_ref, o_ref, *, scale):
    q = q_ref[0]                                    # (Lq, D) bf16
    k = k_ref[0]                                    # (Lk, D) bf16
    s = jax.lax.dot_general(q, k, (((1,), (1,)), ((), ())),
                            preferred_element_type=jnp.float32) * scale
    s = jnp.where(m_ref[0] > 0.5, -1e9, s)
    s = s - jnp.max(s, axis=-1, keepdims=True)
    p = jnp.exp(s)
    # Returned distribution: exact normalization (no approx reciprocal).
    o_ref[0] = (p / jnp.sum(p, axis=-1, keepdims=True)).astype(o_ref.dtype)


def attention_probs(q, k, mask):
    """Single-head attention distribution (copy attention). mask: (B, 1, Lk)."""
    # TODO(synk): MultiheadOnlyAttention internals not provided; implemented as
    # projected scaled-dot-product attention probabilities.
    B, Lq, D = q.shape
    Lk = k.shape[1]
    scale = 1.0 / math.sqrt(D)
    return pl.pallas_call(
        functools.partial(_copy_attn_kernel, scale=scale),
        grid=(B,),
        in_specs=[
            pl.BlockSpec((1, Lq, D), lambda b: (b, 0, 0)),
            pl.BlockSpec((1, Lk, D), lambda b: (b, 0, 0)),
            pl.BlockSpec((1, 1, Lk), lambda b: (b, 0, 0)),
        ],
        out_specs=pl.BlockSpec((1, Lq, Lk), lambda b: (b, 0, 0)),
        out_shape=jax.ShapeDtypeStruct((B, Lq, Lk), jnp.float32),
        compiler_params=pltpu.CompilerParams(
            dimension_semantics=("parallel",),
            vmem_limit_bytes=VMEM_LIMIT),
    )(q, k, mask)


# ----------------------------------------------------------------------------
# Fusion gates / copy-or-generate head (VPU row reductions)
# ----------------------------------------------------------------------------

def _fusion_gate_kernel(*refs, has_residual):
    """g = sigmoid(a.w0 + b.w1 + bias); out = g*a + (1-g)*b [+ residual]."""
    if has_residual:
        a_ref, b_ref, w_ref, bias_ref, r_ref, o_ref = refs
    else:
        a_ref, b_ref, w_ref, bias_ref, o_ref = refs
        r_ref = None
    a = a_ref[...].astype(jnp.float32)
    b = b_ref[...].astype(jnp.float32)
    w = w_ref[...]                                   # (2, D) f32
    logit = (jnp.sum(a * w[0:1, :], axis=-1, keepdims=True)
             + jnp.sum(b * w[1:2, :], axis=-1, keepdims=True)
             + bias_ref[...])
    g = jax.nn.sigmoid(logit)
    y = g * a + (1.0 - g) * b
    if r_ref is not None:
        y = y + r_ref[...].astype(jnp.float32)
    o_ref[...] = y.astype(o_ref.dtype)


def fusion_gate(a, b, w, bias, residual=None):
    """nn.Linear(2D, 1)+Sigmoid gate as a VPU row reduction.  w: (2, D)."""
    lead, D = a.shape[:-1], a.shape[-1]
    a2 = a.reshape(-1, D)
    b2 = b.reshape(-1, D)
    M = a2.shape[0]
    tm = _pick_tile(M, 512, (128, 16, 8))
    in_specs = [
        pl.BlockSpec((tm, D), lambda i: (i, 0)),
        pl.BlockSpec((tm, D), lambda i: (i, 0)),
        pl.BlockSpec((2, D), lambda i: (0, 0)),
        pl.BlockSpec((1, 1), lambda i: (0, 0)),
    ]
    args = [a2, b2, w, bias]
    if residual is not None:
        in_specs.append(pl.BlockSpec((tm, D), lambda i: (i, 0)))
        args.append(residual.reshape(M, D))
    out = pl.pallas_call(
        functools.partial(_fusion_gate_kernel,
                          has_residual=residual is not None),
        grid=(M // tm,),
        in_specs=in_specs,
        out_specs=pl.BlockSpec((tm, D), lambda i: (i, 0)),
        out_shape=jax.ShapeDtypeStruct((M, D), a.dtype),
        compiler_params=pltpu.CompilerParams(
            dimension_semantics=("parallel",)),
    )(*args)
    return out.reshape(*lead, D)


def _rowdot_sigmoid_kernel(x_ref, w_ref, b_ref, o_ref):
    x = x_ref[...].astype(jnp.float32)
    y = jnp.sum(x * w_ref[...], axis=-1, keepdims=True) + b_ref[...]
    o_ref[...] = jax.nn.sigmoid(y).astype(o_ref.dtype)


def rowdot_sigmoid(x, w, bias):
    """sigmoid(x @ w.T + b) for w: (1, D) — VPU reduction, avoids 128x1 MXU."""
    lead, D = x.shape[:-1], x.shape[-1]
    x2 = x.reshape(-1, D)
    M = x2.shape[0]
    tm = _pick_tile(M, 512, (128, 16, 8))
    out = pl.pallas_call(
        _rowdot_sigmoid_kernel,
        grid=(M // tm,),
        in_specs=[
            pl.BlockSpec((tm, D), lambda i: (i, 0)),
            pl.BlockSpec((1, D), lambda i: (0, 0)),
            pl.BlockSpec((1, 1), lambda i: (0, 0)),
        ],
        out_specs=pl.BlockSpec((tm, 1), lambda i: (i, 0)),
        out_shape=jax.ShapeDtypeStruct((M, 1), jnp.float32),
        compiler_params=pltpu.CompilerParams(
            dimension_semantics=("parallel",)),
    )(x2, w, bias)
    return out.reshape(*lead, 1)


# ----------------------------------------------------------------------------
# Model glue (plain JAX around the kernels)
# ----------------------------------------------------------------------------

def _cross_block(pc, ln2, query, mem_kv_src, mask, heads, score=None):
    # LN2 fused into the q projection; KV projection stacked (read mem once).
    q = linear(query, pc["wq"], pc["bq"], ln=ln2)
    kv = linear(mem_kv_src, pc["w_kv"], pc["b_kv"])
    ctx = cross_attention(q, kv, mask, heads, score=score)
    return linear(ctx, pc["wo"], pc["bo"])


def decoder_layer(p, inputs, src_mem, src_pad_mask, tgt_pad_mask, ent_mem,
                  ent_pad_mask, ent_score, phase1_mem, phase1_pad_mask, heads):
    ln1 = (p["ln1_g"], p["ln1_b"])
    ln2 = (p["ln2_g"], p["ln2_b"])
    ffn_ln = (p["ffn_ln_g"], p["ffn_ln_b"])

    # Self-attention: LN1 fused into the stacked QKV projection; the "+ inputs"
    # residual is fused into the output projection.  Causal mask built in-kernel.
    qkv = linear(inputs, p["w_qkv"], p["b_qkv"], ln=ln1)         # (B, T, 3D)
    ctx = self_attention(qkv, tgt_pad_mask, heads)               # (B, T, D)
    query = linear(ctx, p["wo"], p["bo"], residual=inputs)

    word_context = _cross_block(p["ctx_word"], ln2, query, src_mem,
                                src_pad_mask, heads)
    graph_context = _cross_block(p["ctx_graph"], ln2, query, ent_mem,
                                 ent_pad_mask, heads, score=ent_score)
    output_context = fusion_gate(word_context, graph_context,
                                 p["fusion1_w"], p["fusion1_b"])

    phase1_ctx = _cross_block(p["ctx_phase1"], ln2, query, phase1_mem,
                              phase1_pad_mask, heads)
    # fusion2 gate with "+ query" residual fused in.
    x = fusion_gate(output_context, phase1_ctx,
                    p["fusion2_w"], p["fusion2_b"], residual=query)

    # PositionwiseFeedForward: LN (fused) -> W1 -> ReLU -> W2 -> +x (fused).
    inter = linear(x, p["ffn_w1"], p["ffn_b1"], act="relu", ln=ffn_ln)
    out = linear(inter, p["ffn_w2"], p["ffn_b2"], residual=x)
    return out


def decoder_forward(params, tgt, src, memory_bank, ent_extend, ent_context,
                    ent_score, phase1_digits, phase1_context, heads,
                    padding_idx=0):
    D = params["emb"].shape[1]
    tgt_words = tgt.T                          # (B, T)
    src_words = src.T                          # (B, S)
    B, T = tgt_words.shape
    S = src_words.shape[1]

    # Embedding lookup (XLA gather) + PositionalEncoding (dropout = identity).
    emb = params["emb"][tgt]                   # (T, B, D) f32
    output = jnp.transpose(emb, (1, 0, 2)) * math.sqrt(D) + params["pe"][:T][None]
    output = output.astype(jnp.bfloat16)       # activations carried in bf16

    src_mem = memory_bank.reshape(B, -1, D).astype(jnp.bfloat16)
    ent_mem = ent_context.reshape(B, -1, D).astype(jnp.bfloat16)
    phase1_mem = phase1_context.reshape(B, -1, D).astype(jnp.bfloat16)
    ent_words = ent_extend.reshape(B, -1)
    ent_score_ext = ent_score.reshape(B, 1, -1).astype(jnp.float32)
    phase1_words = phase1_digits.reshape(B, -1)

    # Key-pad masks only (B, 1, Lk), bf16; the causal part of the self-attn
    # mask is generated in-kernel with broadcasted_iota.
    tgt_pad_mask = (tgt_words == padding_idx)[:, None, :].astype(jnp.bfloat16)
    src_pad_mask = (src_words == padding_idx)[:, None, :].astype(jnp.bfloat16)
    ent_pad_mask = (ent_words == padding_idx)[:, None, :].astype(jnp.bfloat16)
    p1_pad_mask = (phase1_words == padding_idx)[:, None, :].astype(jnp.bfloat16)

    for lp in params["layers"]:
        output = decoder_layer(lp, output, src_mem, src_pad_mask, tgt_pad_mask,
                               ent_mem, ent_pad_mask, ent_score_ext,
                               phase1_mem, p1_pad_mask, heads)

    output = layer_norm(output, params["ln_g"], params["ln_b"])

    # Copy attention (single head, returns attention distribution).
    q = linear(output, params["copy_wq"], params["copy_bq"])
    k = linear(src_mem, params["copy_wk"], params["copy_bk"])
    copy = attention_probs(q, k, src_pad_mask)          # (B, T, S) f32
    copy = jnp.transpose(copy, (1, 0, 2))               # (T, B, S)

    cog = rowdot_sigmoid(output, params["cog_w"], params["cog_b"])  # (B, T, 1)
    cog = jnp.transpose(cog, (1, 0, 2))                 # (T, B, 1)

    outputs = jnp.transpose(output, (1, 0, 2)).astype(jnp.float32)  # (T, B, D)
    return outputs, {"attn": copy, "copy_or_generate": cog, "src": src_words}


# ----------------------------------------------------------------------------
# Deterministic parameter construction (matmul weights stored in bf16)
# ----------------------------------------------------------------------------

def positional_encoding(max_len, dim):
    pos = jnp.arange(max_len, dtype=jnp.float32)[:, None]
    div = jnp.exp(jnp.arange(0, dim, 2, dtype=jnp.float32)
                  * -(math.log(10000.0) / dim))
    pe = jnp.zeros((max_len, dim), jnp.float32)
    pe = pe.at[:, 0::2].set(jnp.sin(pos * div))
    pe = pe.at[:, 1::2].set(jnp.cos(pos * div))
    return pe


def init_params(key, num_layers, d_model, d_ff, vocab, max_len=512):
    keys = iter(jax.random.split(key, 256))

    def dense(shape, scale=0.02, dtype=jnp.bfloat16):
        return (jax.random.normal(next(keys), shape, jnp.float32)
                * scale).astype(dtype)

    def self_attn_params():
        return {"w_qkv": dense((d_model, 3 * d_model)),
                "b_qkv": jnp.zeros((3 * d_model,), jnp.float32),
                "wo": dense((d_model, d_model)),
                "bo": jnp.zeros((d_model,), jnp.float32)}

    def cross_attn_params():
        return {"wq": dense((d_model, d_model)),
                "bq": jnp.zeros((d_model,), jnp.float32),
                "w_kv": dense((d_model, 2 * d_model)),
                "b_kv": jnp.zeros((2 * d_model,), jnp.float32),
                "wo": dense((d_model, d_model)),
                "bo": jnp.zeros((d_model,), jnp.float32)}

    layers = []
    for _ in range(num_layers):
        layers.append({
            "self_attn_unused": None,
            "w_qkv": None, "b_qkv": None, "wo": None, "bo": None,
        })
    layers = []
    for _ in range(num_layers):
        sa = self_attn_params()
        layers.append({
            "w_qkv": sa["w_qkv"], "b_qkv": sa["b_qkv"],
            "wo": sa["wo"], "bo": sa["bo"],
            "ctx_word": cross_attn_params(),
            "ctx_graph": cross_attn_params(),
            "ctx_phase1": cross_attn_params(),
            "ln1_g": jnp.ones((d_model,), jnp.float32),
            "ln1_b": jnp.zeros((d_model,), jnp.float32),
            "ln2_g": jnp.ones((d_model,), jnp.float32),
            "ln2_b": jnp.zeros((d_model,), jnp.float32),
            "ffn_ln_g": jnp.ones((d_model,), jnp.float32),
            "ffn_ln_b": jnp.zeros((d_model,), jnp.float32),
            "ffn_w1": dense((d_model, d_ff)),
            "ffn_b1": jnp.zeros((d_ff,), jnp.float32),
            "ffn_w2": dense((d_ff, d_model)),
            "ffn_b2": jnp.zeros((d_model,), jnp.float32),
            # gate weights stored as (2, D): row 0 for first arg, row 1 second.
            "fusion1_w": dense((2, d_model), dtype=jnp.float32),
            "fusion1_b": jnp.zeros((1, 1), jnp.float32),
            "fusion2_w": dense((2, d_model), dtype=jnp.float32),
            "fusion2_b": jnp.zeros((1, 1), jnp.float32),
        })

    emb = dense((vocab, d_model), scale=0.1, dtype=jnp.float32)
    emb = emb.at[0].set(0.0)  # padding_idx = 0

    return {
        "emb": emb,
        "pe": positional_encoding(max_len, d_model),
        "layers": layers,
        "ln_g": jnp.ones((d_model,), jnp.float32),
        "ln_b": jnp.zeros((d_model,), jnp.float32),
        "copy_wq": dense((d_model, d_model)),
        "copy_bq": jnp.zeros((d_model,), jnp.float32),
        "copy_wk": dense((d_model, d_model)),
        "copy_bk": jnp.zeros((d_model,), jnp.float32),
        "cog_w": dense((1, d_model), dtype=jnp.float32),
        "cog_b": jnp.zeros((1, 1), jnp.float32),
    }


# ----------------------------------------------------------------------------
# Example run
# ----------------------------------------------------------------------------

if __name__ == "__main__":
    B, T, D, heads, d_ff, L = 2, 8, 128, 4, 256, 2
    vocab = 64
    S = 16                      # src_len = 4 * 4 (memory_bank spatial dims)
    ent_len, word_len = 3, 4    # entword_len = 12
    p_len = 6

    key = jax.random.PRNGKey(0)
    k_param, k_in = jax.random.split(key)
    params = init_params(k_param, L, D, d_ff, vocab)

    ks = jax.random.split(k_in, 8)
    tgt = jax.random.randint(ks[0], (T, B), 1, vocab, dtype=jnp.int32)
    tgt = tgt.at[-2:, :].set(0)                       # some tgt padding
    src = jax.random.randint(ks[1], (S, B), 1, vocab, dtype=jnp.int32)
    src = src.at[-3:, 1].set(0)                       # some src padding
    memory_bank = jax.random.normal(ks[2], (B, 4, 4, D), jnp.float32)
    ent_extend = jax.random.randint(ks[3], (B, ent_len, word_len), 1, vocab,
                                    dtype=jnp.int32)
    ent_extend = ent_extend.at[:, -1, -1].set(0)
    ent_context = jax.random.normal(ks[4], (B, ent_len, word_len, D), jnp.float32)
    ent_score = jax.random.uniform(ks[5], (B, ent_len, word_len), jnp.float32)
    phase1_digits = jax.random.randint(ks[6], (B, p_len), 1, vocab, dtype=jnp.int32)
    phase1_digits = phase1_digits.at[:, -1].set(0)
    phase1_context = jax.random.normal(ks[7], (B, p_len, D), jnp.float32)

    outputs, extra = decoder_forward(params, tgt, src, memory_bank, ent_extend,
                                     ent_context, ent_score, phase1_digits,
                                     phase1_context, heads)
    jax.block_until_ready((outputs, extra["attn"], extra["copy_or_generate"]))
    assert outputs.shape == (T, B, D)
    assert extra["attn"].shape == (T, B, S)
    assert extra["copy_or_generate"].shape == (T, B, 1)
    print("KERNEL_OK")
</pallas_src>

<mosaic_0001>
module attributes {stable_mosaic.version = 11 : i64} {
  func.func @_linear_kernel(%arg0: i32, %arg1: i32, %arg2: i32, %arg3: memref<16x128xbf16, #tpu.memory_space<vmem>>, %arg4: memref<128x384xbf16, #tpu.memory_space<vmem>>, %arg5: memref<1x384xf32, #tpu.memory_space<vmem>>, %arg6: memref<1x128xf32, #tpu.memory_space<vmem>>, %arg7: memref<1x128xf32, #tpu.memory_space<vmem>>, %arg8: memref<16x384xbf16, #tpu.memory_space<vmem>>, %arg9: memref<16x384xf32, #tpu.memory_space<vmem>>) attributes {dimension_semantics = [#tpu.dimension_semantics<parallel>, #tpu.dimension_semantics<parallel>, #tpu.dimension_semantics<arbitrary>], iteration_bounds = array<i64: 1, 1, 1>, scalar_prefetch = 0 : i64, scratch_operands = 1 : i64, tpu.core_type = #tpu.core_type<tc>, window_params = [{transform_indices = @transform_0, window_bounds = array<i64: 16, 128>}, {transform_indices = @transform_1, window_bounds = array<i64: 128, 384>}, {transform_indices = @transform_2, window_bounds = array<i64: 1, 384>}, {pipeline_mode = #tpu.pipeline_mode<synchronous>, transform_indices = @transform_3, window_bounds = array<i64: 1, 128>}, {pipeline_mode = #tpu.pipeline_mode<synchronous>, transform_indices = @transform_4, window_bounds = array<i64: 1, 128>}, {transform_indices = @transform_5, window_bounds = array<i64: 16, 384>}]} {
    %c0_i32 = arith.constant 0 : i32
    %0 = arith.cmpi eq, %arg2, %c0_i32 : i32
    %1 = arith.extui %0 : i1 to i32
    %c0_i32_0 = arith.constant 0 : i32
    %2 = arith.cmpi ne, %1, %c0_i32_0 : i32
    scf.if %2 {
      %cst_19 = arith.constant 0.000000e+00 : f32
      %38 = vector.broadcast %cst_19 : f32 to vector<16x384xf32>
      %c0_20 = arith.constant 0 : index
      %c0_21 = arith.constant 0 : index
      %39 = vector.load %arg9[%c0_20, %c0_21] : memref<16x384xf32, #tpu.memory_space<vmem>>, vector<16x384xf32>
      tpu.vector_store %arg9[%c0_20, %c0_21], %38 {strides = array<i32>} : memref<16x384xf32, #tpu.memory_space<vmem>>, vector<16x384xf32>,
    } else {
    }
    %c0 = arith.constant 0 : index
    %c0_1 = arith.constant 0 : index
    %3 = vector.load %arg3[%c0, %c0_1] : memref<16x128xbf16, #tpu.memory_space<vmem>>, vector<16x128xbf16>
    %4 = arith.extf %3 : vector<16x128xbf16> to vector<16x128xf32>
    %cst = arith.constant dense<0.000000e+00> : vector<16xf32>
    %5 = vector.multi_reduction <add>, %4, %cst [1] : vector<16x128xf32> to vector<16xf32>
    %6 = vector.shape_cast %5 : vector<16xf32> to vector<16x1xf32>
    %cst_2 = arith.constant 1.280000e+02 : f32
    %7 = vector.broadcast %cst_2 : f32 to vector<16x1xf32>
    %8 = arith.divf %6, %7 : vector<16x1xf32>
    %9 = vector.broadcast %8 : vector<16x1xf32> to vector<16x128xf32>
    %10 = arith.subf %4, %9 : vector<16x128xf32>
    %11 = arith.mulf %10, %10 : vector<16x128xf32>
    %cst_3 = arith.constant dense<0.000000e+00> : vector<16xf32>
    %12 = vector.multi_reduction <add>, %11, %cst_3 [1] : vector<16x128xf32> to vector<16xf32>
    %13 = vector.shape_cast %12 : vector<16xf32> to vector<16x1xf32>
    %cst_4 = arith.constant 1.280000e+02 : f32
    %14 = vector.broadcast %cst_4 : f32 to vector<16x1xf32>
    %15 = arith.divf %13, %14 : vector<16x1xf32>
    %16 = vector.broadcast %8 : vector<16x1xf32> to vector<16x128xf32>
    %17 = arith.subf %4, %16 : vector<16x128xf32>
    %cst_5 = arith.constant 9.99999997E-7 : f32
    %18 = vector.broadcast %cst_5 : f32 to vector<16x1xf32>
    %19 = arith.addf %15, %18 : vector<16x1xf32>
    %20 = math.rsqrt %19 : vector<16x1xf32>
    %21 = vector.broadcast %20 : vector<16x1xf32> to vector<16x128xf32>
    %22 = arith.mulf %17, %21 : vector<16x128xf32>
    %c0_6 = arith.constant 0 : index
    %c0_7 = arith.constant 0 : index
    %23 = vector.load %arg6[%c0_6, %c0_7] : memref<1x128xf32, #tpu.memory_space<vmem>>, vector<1x128xf32>
    %24 = vector.broadcast %23 : vector<1x128xf32> to vector<16x128xf32>
    %25 = arith.mulf %22, %24 : vector<16x128xf32>
    %c0_8 = arith.constant 0 : index
    %c0_9 = arith.constant 0 : index
    %26 = vector.load %arg7[%c0_8, %c0_9] : memref<1x128xf32, #tpu.memory_space<vmem>>, vector<1x128xf32>
    %27 = vector.broadcast %26 : vector<1x128xf32> to vector<16x128xf32>
    %28 = arith.addf %25, %27 : vector<16x128xf32>
    %29 = arith.truncf %28 : vector<16x128xf32> to vector<16x128xbf16>
    %c0_10 = arith.constant 0 : index
    %c0_11 = arith.constant 0 : index
    %30 = vector.load %arg9[%c0_10, %c0_11] : memref<16x384xf32, #tpu.memory_space<vmem>>, vector<16x384xf32>
    %c0_12 = arith.constant 0 : index
    %c0_13 = arith.constant 0 : index
    %31 = vector.load %arg4[%c0_12, %c0_13] : memref<128x384xbf16, #tpu.memory_space<vmem>>, vector<128x384xbf16>
    %cst_14 = arith.constant dense<0.000000e+00> : vector<16x384xf32>
    %32 = tpu.matmul %29, %31, %cst_14 {dimension_numbers = #tpu.dot_dimension_numbers<[1], [0], [0], [1], [0, 0, 1, 1], [], []>} : vector<16x128xbf16>, vector<128x384xbf16>, vector<16x384xf32> -> vector<16x384xf32>
    %33 = arith.addf %30, %32 : vector<16x384xf32>
    %c0_15 = arith.constant 0 : index
    %c0_16 = arith.constant 0 : index
    %34 = vector.load %arg9[%c0_15, %c0_16] : memref<16x384xf32, #tpu.memory_space<vmem>>, vector<16x384xf32>
    tpu.vector_store %arg9[%c0_15, %c0_16], %33 {strides = array<i32>} : memref<16x384xf32, #tpu.memory_space<vmem>>, vector<16x384xf32>,
    %c0_i32_17 = arith.constant 0 : i32
    %35 = arith.cmpi eq, %arg2, %c0_i32_17 : i32
    %36 = arith.extui %35 : i1 to i32
    %c0_i32_18 = arith.constant 0 : i32
    %37 = arith.cmpi ne, %36, %c0_i32_18 : i32
    scf.if %37 {
      %c0_19 = arith.constant 0 : index
      %c0_20 = arith.constant 0 : index
      %38 = vector.load %arg9[%c0_19, %c0_20] : memref<16x384xf32, #tpu.memory_space<vmem>>, vector<16x384xf32>
      %c0_21 = arith.constant 0 : index
      %c0_22 = arith.constant 0 : index
      %39 = vector.load %arg5[%c0_21, %c0_22] : memref<1x384xf32, #tpu.memory_space<vmem>>, vector<1x384xf32>
      %40 = vector.broadcast %39 : vector<1x384xf32> to vector<16x384xf32>
      %41 = arith.addf %38, %40 : vector<16x384xf32>
      %42 = arith.truncf %41 : vector<16x384xf32> to vector<16x384xbf16>
      %c0_23 = arith.constant 0 : index
      %c0_24 = arith.constant 0 : index
      %43 = vector.load %arg8[%c0_23, %c0_24] : memref<16x384xbf16, #tpu.memory_space<vmem>>, vector<16x384xbf16>
      tpu.vector_store %arg8[%c0_23, %c0_24], %42 {strides = array<i32>} : memref<16x384xbf16, #tpu.memory_space<vmem>>, vector<16x384xbf16>,
    } else {
    }
    return
  }
  func.func @transform_0(%arg0: i32, %arg1: i32, %arg2: i32) -> (i32, i32) {
    %c0_i32 = arith.constant 0 : i32
    return %arg0, %arg2 : i32, i32
  }
  func.func @transform_1(%arg0: i32, %arg1: i32, %arg2: i32) -> (i32, i32) {
    %c0_i32 = arith.constant 0 : i32
    return %arg2, %arg1 : i32, i32
  }
  func.func @transform_2(%arg0: i32, %arg1: i32, %arg2: i32) -> (i32, i32) {
    %c0_i32 = arith.constant 0 : i32
    %c0_i32_0 = arith.constant 0 : i32
    return %c0_i32, %arg1 : i32, i32
  }
  func.func @transform_3(%arg0: i32, %arg1: i32, %arg2: i32) -> (i32, i32) {
    %c0_i32 = arith.constant 0 : i32
    %c0_i32_0 = arith.constant 0 : i32
    %c0_i32_1 = arith.constant 0 : i32
    return %c0_i32, %c0_i32_0 : i32, i32
  }
  func.func @transform_4(%arg0: i32, %arg1: i32, %arg2: i32) -> (i32, i32) {
    %c0_i32 = arith.constant 0 : i32
    %c0_i32_0 = arith.constant 0 : i32
    %c0_i32_1 = arith.constant 0 : i32
    return %c0_i32, %c0_i32_0 : i32, i32
  }
  func.func @transform_5(%arg0: i32, %arg1: i32, %arg2: i32) -> (i32, i32) {
    %c0_i32 = arith.constant 0 : i32
    return %arg0, %arg1 : i32, i32
  }
}

</mosaic_0001>

<bundles_post_ra>
// kernel: tpu_custom_call.1
= control target key start
LH: loop header
LB: loop body
LE: loop exit
PB: predicated region body
PF: predicated region fallthrough
CT: control target
= control target key end

     0   :  { %10 = vsyncpa [#allocation4], 0  ;;  %s737_s0 = inlined_call_operand.hbm [shape: bf16[16,128], index: 0, kind: input, shape index: {}]   ;;  %s738_s1 = inlined_call_operand.hbm [shape: bf16[128,384], index: 1, kind: input, shape index: {}]   ;;  %s739_s2 = inlined_call_operand.vmem [shape: f32[1,384], index: 2, kind: input, shape index: {}]   ;;  %s740_s3 = inlined_call_operand.vmem [shape: f32[1,128], index: 3, kind: input, shape index: {}]   ;;  %s741_s4 = inlined_call_operand.vmem [shape: f32[1,128], index: 4, kind: input, shape index: {}]   ;;  %s742_s5 = inlined_call_operand.hbm [shape: bf16[16,384], index: 5, kind: output, shape index: {}]  }
   0x1   :  { %11 = vsyncpa [#allocation7], 0 }
   0x2   :  { %12 = vsyncpa [#allocation5], 0  ;;  %s627_s18 = smov [#allocation3]   ;;  %s555_s22 = scalar_lea.hbm %s737_s0, 128 }
   0x3   :  { %s18_s19 = sshll.u32 %s627_s18, 4  ;;  %p556_p0 = scmp.ne.s32.totalorder %s737_s0, %s555_s22  ;;  %s19_s19 = int_to_ptr.vmem [resolvable:$true] %s18_s19 }
   0x4   :  { %p559_p1 = scmp.lt.u32.totalorder %s555_s22, %s737_s0 }
   0x6   :  { %p561_p2 = pnand %p559_p1, %p556_p0 }
   0x8   :  { %564 = shalt.err (!%p561_p2)
}
   0x9   :  { %s565_s27 = scalar_lea.vmem %s19_s19, 128  ;;  %p570_p4 = scmp.lt.s32.totalorder %s19_s19, %s19_s19 }
   0xa   :  { %p566_p3 = scmp.ne.s32.totalorder %s19_s19, %s565_s27  ;;  %p571_p5 = scmp.lt.s32.totalorder %s565_s27, %s565_s27 }
   0xc   :  { %p572_p6 = por %p571_p5, %p570_p4 }
   0xe   :  { %p573_p7 = pnand %p572_p6, %p566_p3 }
  0x10   :  { %576 = shalt.err (!%p573_p7)
}
  0x11   :  { %s628_s28 = smov 64   ;;  %s629_s29 = smov 4  }
  0x12   :  { %24 = dma.hbm_to_vmem [thread:$0]  %s737_s0, 128, %s19_s19, [#allocation4], %s628_s28, %s628_s28, %s629_s29  }
  0x13   :  { %s630_s7 = smov [#allocation6]   ;;  %s577_s11 = scalar_lea.hbm %s738_s1, 3072 }
  0x14   :  { %s30_s8 = sshll.u32 %s630_s7, 4  ;;  %p578_p8 = scmp.ne.s32.totalorder %s738_s1, %s577_s11  ;;  %s31_s8 = int_to_ptr.vmem [resolvable:$true] %s30_s8 }
  0x15   :  { %p581_p9 = scmp.lt.u32.totalorder %s577_s11, %s738_s1 }
  0x17   :  { %p583_p10 = pnand %p581_p9, %p578_p8 }
  0x19   :  { %586 = shalt.err (!%p583_p10)
}
  0x1a   :  { %s587_s16 = scalar_lea.vmem %s31_s8, 3072  ;;  %p592_p12 = scmp.lt.s32.totalorder %s31_s8, %s31_s8 }
  0x1b   :  { %p588_p11 = scmp.ne.s32.totalorder %s31_s8, %s587_s16  ;;  %p593_p13 = scmp.lt.s32.totalorder %s587_s16, %s587_s16 }
  0x1d   :  { %p594_p0 = por %p593_p13, %p592_p12 }
  0x1f   :  { %p595_p1 = pnand %p594_p0, %p588_p11 }
  0x21   :  { %598 = shalt.err (!%p595_p1)
}
  0x22   :  { %s631_s0 = smov 192   ;;  %s632_s17 = smov 12  }
  0x23   :  { %36 = dma.hbm_to_vmem [thread:$0]  %s738_s1, 3072, %s31_s8, [#allocation7], %s631_s0, %s631_s0, %s632_s17  }
  0x24   :  { %621 = dma.done.wait [#allocation4], 128  }
  0x25   :  { %622 = vsyncadd [#allocation4], 4294967168 }
  0x26   :  { %623 = dma.done.wait [#allocation7], 3072  }
  0x27   :  { %624 = vsyncadd [#allocation7], 4294964224  ;;  %v477_v0 = vld [vmem:[#allocation3] sm:$0xff]   ;;  %v519_v3 = vld [vmem:[#allocation6 + $0x4] ss:$12 sps:$4 sm:$0xff]   ;;  %v633_v5 = vmov 0.0   ;;  %v379_v54 = vlaneseq }
  0x28   :  { %v478_v1 = vunpack.c.l.bf16 %v477_v0  ;;  %v479_v2 = vunpack.c.h.bf16 %v477_v0  ;;  %v521_v4 = vld [vmem:[#allocation6] ss:$12 sps:$4 sm:$0xff]   ;;  %489 = vmatprep.subr.bf16.mxu1 %v633_v5  ;;  %v522_v6 = vld [vmem:[#allocation6 + $0x8] ss:$12 sps:$4 sm:$0xff]   ;;  %272 = vmatprep.subr.bf16.mxu0 %v519_v3  ;;  %v525_v16 = vld [vmem:[#allocation6 + $0x18] ss:$12 sps:$4 sm:$0xff]  }
  0x29   :  { %v523_v7 = vld [vmem:[#allocation6 + $0x1c] ss:$12 sps:$4 sm:$0xff]   ;;  %273 = vmatpush1.bf16.msra.mxu0 %v521_v4  ;;  %490 = vmatpush3.bf16.msra.mxu1 %v522_v6  ;;  %v526_v17 = vld [vmem:[#allocation6 + $0x20] ss:$12 sps:$4 sm:$0xff]   ;;  %v530_v20 = vld [vmem:[#allocation6 + $0x38] ss:$12 sps:$4 sm:$0xff]  }
  0x2a   :  { %64 = vadd.xlane.f32.xlu0 %v478_v1  ;;  %274 = vmatprep.subr.bf16.mxu0 %v523_v7  ;;  %v527_v18 = vld [vmem:[#allocation6 + $0x34] ss:$12 sps:$4 sm:$0xff]   ;;  %v529_v19 = vld [vmem:[#allocation6 + $0x30] ss:$12 sps:$4 sm:$0xff]   ;;  %v531_v21 = vld [vmem:[#allocation6 + $0x4c] ss:$12 sps:$4 sm:$0xff]  }
  0x2b   :  { %491 = vmatprep.subr.bf16.mxu1 %v633_v5  ;;  %v533_v22 = vld [vmem:[#allocation6 + $0x48] ss:$12 sps:$4 sm:$0xff]   ;;  %v534_v23 = vld [vmem:[#allocation6 + $0x50] ss:$12 sps:$4 sm:$0xff]   ;;  %v537_v25 = vld [vmem:[#allocation6 + $0x60] ss:$12 sps:$4 sm:$0xff]  }
  0x2c   :  { %v535_v24 = vld [vmem:[#allocation6 + $0x64] ss:$12 sps:$4 sm:$0xff]   ;;  %v538_v26 = vld [vmem:[#allocation6 + $0x68] ss:$12 sps:$4 sm:$0xff]   ;;  %v542_v29 = vld [vmem:[#allocation6 + $0x80] ss:$12 sps:$4 sm:$0xff]  }
  0x2d   :  { %275 = vmatpush1.bf16.msra.mxu0 %v525_v16  ;;  %492 = vmatpush3.bf16.msra.mxu1 %v526_v17  ;;  %v539_v27 = vld [vmem:[#allocation6 + $0x7c] ss:$12 sps:$4 sm:$0xff]   ;;  %v541_v28 = vld [vmem:[#allocation6 + $0x78] ss:$12 sps:$4 sm:$0xff]   ;;  %v543_v30 = vld [vmem:[#allocation6 + $0x94] ss:$12 sps:$4 sm:$0xff]  }
  0x2e   :  { %66 = vadd.xlane.f32.xlu0 %v479_v2  ;;  %493 = vmatprep.subr.bf16.mxu1 %v633_v5  ;;  %v634_v31 = vmov 0   ;;  %vm635_vm0 = vmmov 0   ;;  %v545_v32 = vld [vmem:[#allocation6 + $0x90] ss:$12 sps:$4 sm:$0xff]   ;;  %v546_v33 = vld [vmem:[#allocation6 + $0x98] ss:$12 sps:$4 sm:$0xff]  }
  0x2f   :  { %276 = vmatprep.subr.bf16.mxu0 %v527_v18  ;;  %304 = vmatprep.mubr.bf16.mxu0 %v634_v31  ;;  %v547_v34 = vld [vmem:[#allocation6 + $0xac] ss:$12 sps:$4 sm:$0xff]   ;;  %v549_v35 = vld [vmem:[#allocation6 + $0xa8] ss:$12 sps:$4 sm:$0xff]   ;;  %v550_v36 = vld [vmem:[#allocation6 + $0xb0] ss:$12 sps:$4 sm:$0xff]  }
  0x30   :  { %505 = vmatprep.mubr.msk.bf16.mxu1 %vm635_vm0, %v633_v5  ;;  %v442_v45 = vld [vmem:[%s740_s3] ss:$0 sm:$0xff]  ;;  %v380_v55 = vshrl.u32 %v379_v54, 7 }
  0x31   :  { %277 = vmatpush1.bf16.msra.mxu0 %v529_v19  ;;  %494 = vmatpush3.bf16.msra.mxu1 %v530_v20  ;;  %v443_v49 = vld [vmem:[%s741_s4] ss:$0 sm:$0xff]  ;;  %s636_s4 = smov [#allocation8]  }
  0x32   :  { %495 = vmatprep.subr.bf16.mxu1 %v633_v5  ;;  %278 = vmatprep.subr.bf16.mxu0 %v531_v21  ;;  %v381_v56 = vsub.s32 0, %v380_v55  ;;  %v389_v57 = vsub.s32 2, %v380_v55  ;;  %v377_v58 = vld [vmem:[%s739_s2] sm:$0x7]  ;;  %v385_v59 = vsub.s32 1, %v380_v55  ;;  %s429_s2 = sshll.u32 %s636_s4, 4  ;;  %s430_s2 = int_to_ptr.vmem [resolvable:$true] %s429_s2 }
  0x33   :  { %s599_s24 = scalar_lea.vmem %s430_s2, 384  ;;  %p604_p3 = scmp.lt.s32.totalorder %s430_s2, %s430_s2 }
  0x34   :  { %v382_v60 = vrot.slane %v377_v58, %v381_v56  ;;  %v390_v61 = vrot.slane %v377_v58, %v389_v57  ;;  %v386_v62 = vrot.slane %v377_v58, %v385_v59  ;;  %p600_p2 = scmp.ne.s32.totalorder %s430_s2, %s599_s24  ;;  %p605_p4 = scmp.lt.s32.totalorder %s599_s24, %s599_s24 }
  0x35   :  { %279 = vmatpush1.bf16.msra.mxu0 %v533_v22  ;;  %496 = vmatpush3.bf16.msra.mxu1 %v534_v23 }
  0x36   :  { %497 = vmatprep.subr.bf16.mxu1 %v633_v5  ;;  %280 = vmatprep.subr.bf16.mxu0 %v535_v24  ;;  %p606_p5 = por %p605_p4, %p604_p3 }
  0x38   :  { %p607_p6 = pnand %p606_p5, %p600_p2 }
  0x39   :  { %281 = vmatpush1.bf16.msra.mxu0 %v537_v25  ;;  %498 = vmatpush3.bf16.msra.mxu1 %v538_v26 }
  0x3a   :  { %282 = vmatprep.subr.bf16.mxu0 %v539_v27  ;;  %499 = vmatprep.subr.bf16.mxu1 %v633_v5 }
  0x3d   :  { %283 = vmatpush1.bf16.msra.mxu0 %v541_v28  ;;  %500 = vmatpush3.bf16.msra.mxu1 %v542_v29 }
  0x3e   :  { %284 = vmatprep.subr.bf16.mxu0 %v543_v30  ;;  %501 = vmatprep.subr.bf16.mxu1 %v633_v5 }
  0x41   :  { %285 = vmatpush1.bf16.msra.mxu0 %v545_v32  ;;  %502 = vmatpush3.bf16.msra.mxu1 %v546_v33 }
  0x42   :  { %286 = vmatprep.subr.bf16.mxu0 %v547_v34  ;;  %503 = vmatprep.subr.bf16.mxu1 %v633_v5 }
  0x45   :  { %287 = vmatpush1.bf16.msra.mxu0 %v549_v35  ;;  %504 = vmatpush3.bf16.msra.mxu1 %v550_v36 }
  0xb7   :  { %v65_v8 = vpop.xlane.xlu0 %64 }
  0xb8   :  { %v69_v9 = vmul.f32 0.0078125, %v65_v8 }
  0xba   :  { %v696_v10 = vsub.f32 %v478_v1, %v69_v9 }
  0xbb   :  { %v67_v11 = vpop.xlane.xlu0 %66 }
  0xbc   :  { %v70_v12 = vmul.f32 0.0078125, %v67_v11  ;;  %v73_v13 = vmul.f32 %v696_v10, %v696_v10 }
  0xbe   :  { %v700_v14 = vsub.f32 %v479_v2, %v70_v12  ;;  %75 = vadd.xlane.f32.xlu1 %v73_v13 }
  0xc0   :  { %v74_v15 = vmul.f32 %v700_v14, %v700_v14 }
  0xc2   :  { %77 = vadd.xlane.f32.xlu1 %v74_v15 }
 0x14b   :  { %v76_v37 = vpop.xlane.xlu1 %75 }
 0x14c   :  { %v79_v38 = vmul.f32 0.0078125, %v76_v37 }
 0x14e   :  { %v81_v39 = vadd.f32 1e-06, %v79_v38 }
 0x14f   :  { %v78_v40 = vpop.xlane.xlu1 %77 }
 0x150   :  { %551 = vrsqrt.f32 %v81_v39  ;;  %v80_v41 = vmul.f32 0.0078125, %v78_v40 }
 0x152   :  { %v82_v42 = vadd.f32 1e-06, %v80_v41 }
 0x154   :  { %553 = vrsqrt.f32 %v82_v42 }
 0x15a   :  { %v552_v43 = vpop.eup %551 }
 0x15b   :  { %v85_v44 = vmul.f32 %v552_v43, %v696_v10 }
 0x15d   :  { %v94_v48 = vmul.f32 %v442_v45, %v85_v44 }
 0x15e   :  { %v554_v46 = vpop.eup %553 }
 0x15f   :  { %v86_v47 = vmul.f32 %v554_v46, %v700_v14  ;;  %v103_v51 = vadd.f32 %v443_v49, %v94_v48 }
 0x161   :  { %v95_v50 = vmul.f32 %v442_v45, %v86_v47 }
 0x163   :  { %v104_v52 = vadd.f32 %v443_v49, %v95_v50 }
 0x165   :  { %v105_v53 = vpack.c.bf16 %v104_v52, %v103_v51 }
 0x167   :  { %305 = vmatmul.mubr.bf16.vlgmr.msra.gmra.mrb[0].mxu0 %v105_v53  ;;  %506 = vmatmul.mubr.bf16.vlgmr.msra.gmra.mrb[0].mxu1 %v105_v53 }
 0x23a   :  { %v306_v63 = vpop.f32.mrb[0].mxu0  ;;  %v349_v0 = vpop.f32.mrb[0].mxu1 }
 0x23b   :  { %v394_v1 = vadd.f32 %v382_v60, %v306_v63  ;;  %v396_v2 = vadd.f32 %v390_v61, %v349_v0  ;;  %v308_v3 = vpop.f32.mrb[1].mxu0  ;;  %v507_v4 = vpop.f32.mrb[1].mxu1 }
 0x23c   :  { %v395_v5 = vadd.f32 %v386_v62, %v308_v3  ;;  %v310_v6 = vpop.f32.mrb[2].mxu0  ;;  %v352_v7 = vpop.f32.mrb[2].mxu1 }
 0x23d   :  { %v473_v8 = vpack.c.bf16 %v396_v2, %v396_v2  ;;  %v397_v9 = vadd.f32 %v382_v60, %v310_v6  ;;  %v399_v10 = vadd.f32 %v390_v61, %v352_v7  ;;  %v312_v11 = vpop.f32.mrb[3].mxu0  ;;  %v508_v12 = vpop.f32.mrb[3].mxu1 }
 0x23e   :  { %v472_v13 = vpack.c.bf16 %v395_v5, %v394_v1  ;;  %v398_v14 = vadd.f32 %v386_v62, %v312_v11 }
 0x23f   :  { %421 = vst [vmem:[#allocation8 + $0x8] sm:$0xf] %v473_v8  ;;  %v475_v15 = vpack.c.bf16 %v399_v10, %v399_v10 }
 0x240   :  { %420 = vst [vmem:[#allocation8] sm:$0xff] %v472_v13  ;;  %v474_v16 = vpack.c.bf16 %v398_v14, %v397_v9 }
 0x241   :  { %423 = vst [vmem:[#allocation8 + $0x14] sm:$0xf] %v475_v15 }
 0x242   :  { %422 = vst [vmem:[#allocation8 + $0xc] sm:$0xff] %v474_v16 }
 0x243   :  { %610 = shalt.err (!%p607_p6)
}
 0x244   :  { %s611_s27 = scalar_lea.hbm %s742_s5, 384 }
 0x245   :  { %p612_p7 = scmp.ne.s32.totalorder %s742_s5, %s611_s27  ;;  %p615_p8 = scmp.lt.u32.totalorder %s611_s27, %s742_s5 }
 0x247   :  { %p617_p9 = pnand %p615_p8, %p612_p7 }
 0x249   :  { %620 = shalt.err (!%p617_p9)
}
 0x24a   :  { %435 = dma.vmem_to_hbm [thread:$0]  %s430_s2, 384, %s742_s5, [#allocation5], %s631_s0, %s631_s0, %s632_s17  }
 0x24b   :  { %625 = dma.done.wait [#allocation5], 384  }
 0x24c   :  { %626 = vsyncadd [#allocation5], 4294966912 }
 0x24d   :  { %439 = vsyncpa [#allocation4], 1 }
 0x24e   :  { %440 = vsyncpa [#allocation7], 1 }
 0x24f   :  { %441 = vsyncpa [#allocation5], 1 }

</bundles_post_ra>
